<compile_context>
chip_gen: v7x
topology: tpu7x:2x2x1
jax: 0.10.0
libtpu: 0.0.40
codegen_flags: <defaults>
</compile_context>

<pallas_src>
import functools

import jax
import jax.numpy as jnp
from jax.experimental import pallas as pl
from jax.experimental.pallas import tpu as pltpu

EPS = 1e-5


def _round_up(x, m):
    return (x + m - 1) // m * m


def _conv_block_kernel(q_ref, w_ref, o_ref, *, Ho, Wo, Lout_pad, eps):
    # q_ref: (1, 4, Cin_pad, Lq_pad) bf16 polyphase planes of the reflection-padded image.
    #        plane p = 2*(row_parity) + col_parity, spatial (Ho+1, Wo+1) flattened on lanes.
    # w_ref: (9, Cout, Cin_pad) bf16 per-tap weights, tap t = di*3 + dj.
    # o_ref: (1, Cout, Lout_pad) f32 output, spatial (Ho, Wo+1) flattened (+ alignment pad).
    cout = w_ref.shape[1]
    wp1 = Wo + 1

    # Implicit GEMM: 9 accumulating tap matmuls, f32 accumulation.
    acc = jnp.zeros((cout, Lout_pad), dtype=jnp.float32)
    for di in range(3):
        for dj in range(3):
            p = (di % 2) * 2 + (dj % 2)                # polyphase plane of this tap
            off = (di // 2) * wp1 + (dj // 2)          # static lane shift inside the plane
            x_tap = q_ref[0, p, :, off:off + Lout_pad]     # (Cin_pad, Lout_pad) bf16
            w_tap = w_ref[di * 3 + dj]                     # (Cout, Cin_pad)     bf16
            acc = acc + jnp.dot(w_tap, x_tap, preferred_element_type=jnp.float32)

    # InstanceNorm2d (affine=False): stats over the Ho*Wo valid positions only.
    lane = jax.lax.broadcasted_iota(jnp.int32, (1, Lout_pad), 1)
    valid = jnp.logical_and(lane < Ho * wp1, lane % wp1 < Wo)      # (1, Lout_pad)
    inv_cnt = 1.0 / float(Ho * Wo)
    mean = jnp.sum(jnp.where(valid, acc, 0.0), axis=1, keepdims=True) * inv_cnt
    diff = jnp.where(valid, acc - mean, 0.0)
    var = jnp.sum(diff * diff, axis=1, keepdims=True) * inv_cnt
    inv_std = jax.lax.rsqrt(var + eps)

    # ReLU + lane-dense store.
    out = jnp.maximum((acc - mean) * inv_std, 0.0)
    o_ref[0] = out.astype(o_ref.dtype)


def conv_block_forward(x, weight, bias=None, stride=2):
    """ConvBlock(down=True) forward.  x: (N, Cin, H, W) NCHW, weight: (Cout, Cin, 3, 3).

    `bias` is accepted for API parity but unused: InstanceNorm(affine=False) subtracts the
    per-channel mean immediately after the conv, so the result is independent of the bias.
    """
    assert stride == 2, "ConvBlock default uses stride=2"
    del bias
    N, Cin, H, W = x.shape
    Cout = weight.shape[0]
    k, pad = 3, 1
    Ho = (H + 2 * pad - k) // stride + 1
    Wo = (W + 2 * pad - k) // stride + 1
    wp1 = Wo + 1

    Cin_pad = _round_up(Cin, 8)                    # sublane-friendly contraction dim
    L = Ho * wp1                                   # flattened (Ho, Wo+1) spatial axis
    Lout_pad = _round_up(L, 128)                   # lane-dense output slab (unmasked stores)
    Lq_pad = _round_up(Lout_pad + wp1 + 1, 128)    # room for the largest tap shift (Wo+2)

    # Reflection pad (matches padding_mode='reflect').
    xp = jnp.pad(x, ((0, 0), (0, 0), (pad, pad), (pad, pad)), mode="reflect")

    # 4 polyphase planes: Q[:, 2a+b, ci, i*(Wo+1)+j] = xp[:, ci, 2i+a, 2j+b].
    planes = []
    for a in range(2):
        for b in range(2):
            q = xp[:, :, a::2, b::2][:, :, :Ho + 1, :Wo + 1]
            q = jnp.pad(q, ((0, 0), (0, 0),
                            (0, Ho + 1 - q.shape[2]), (0, Wo + 1 - q.shape[3])))
            planes.append(q.reshape(N, Cin, (Ho + 1) * (Wo + 1)))
    Q = jnp.stack(planes, axis=1)                                  # (N, 4, Cin, (Ho+1)*(Wo+1))
    Q = jnp.pad(Q, ((0, 0), (0, 0), (0, Cin_pad - Cin), (0, Lq_pad - Q.shape[-1])))
    Q = Q.astype(jnp.bfloat16)

    # Per-tap weights (9, Cout, Cin_pad), bf16.
    w_taps = jnp.transpose(weight, (2, 3, 0, 1)).reshape(9, Cout, Cin)
    w_taps = jnp.pad(w_taps, ((0, 0), (0, 0), (0, Cin_pad - Cin))).astype(jnp.bfloat16)

    kernel = functools.partial(_conv_block_kernel, Ho=Ho, Wo=Wo, Lout_pad=Lout_pad, eps=EPS)
    out_flat = pl.pallas_call(
        kernel,
        out_shape=jax.ShapeDtypeStruct((N, Cout, Lout_pad), x.dtype),
        grid_spec=pltpu.PrefetchScalarGridSpec(
            num_scalar_prefetch=0,
            grid=(N,),
            in_specs=[
                pl.BlockSpec((1, 4, Cin_pad, Lq_pad), lambda n: (n, 0, 0, 0)),
                pl.BlockSpec((9, Cout, Cin_pad), lambda n: (0, 0, 0)),
            ],
            out_specs=pl.BlockSpec((1, Cout, Lout_pad), lambda n: (n, 0, 0)),
        ),
        compiler_params=pltpu.CompilerParams(
            dimension_semantics=("parallel",),
            # default scoped VMEM limit is ample for whole-image blocks at these shapes;
            # raise vmem_limit_bytes here if larger per-image tiles are used on v6e.
        ),
    )(Q, w_taps)

    # (N, Cout, Ho*(Wo+1)) is NCHW-flattened with one pad column per row: strip it.
    out = out_flat[:, :, :L].reshape(N, Cout, Ho, wp1)[:, :, :, :Wo]
    return out


if __name__ == "__main__":
    # Small shapes consistent with the module: ConvBlock(in=4, out=8, down=True, stride=2).
    N, Cin, H, W = 2, 4, 16, 16
    Cout = 8

    key = jax.random.PRNGKey(0)
    kx, kw, kb = jax.random.split(key, 3)
    x = jax.random.normal(kx, (N, Cin, H, W), dtype=jnp.float32)
    fan_in = Cin * 3 * 3
    weight = jax.random.normal(kw, (Cout, Cin, 3, 3), dtype=jnp.float32) * (1.0 / fan_in) ** 0.5
    bias = jax.random.normal(kb, (Cout,), dtype=jnp.float32) * 0.01  # unused (cancelled by IN)

    y = conv_block_forward(x, weight, bias, stride=2)
    jax.block_until_ready(y)

    assert y.shape == (N, Cout, H // 2, W // 2)
    assert bool(jnp.all(jnp.isfinite(y)))
    print("KERNEL_OK")
</pallas_src>

<mosaic_0001>
module attributes {stable_mosaic.version = 11 : i64} {
  func.func @_conv_block_kernel(%arg0: i32, %arg1: memref<1x4x8x256xbf16, #tpu.memory_space<vmem>>, %arg2: memref<9x8x8xbf16, #tpu.memory_space<vmem>>, %arg3: memref<1x8x128xf32, #tpu.memory_space<vmem>>) attributes {dimension_semantics = [#tpu.dimension_semantics<parallel>], iteration_bounds = array<i64: 2>, scalar_prefetch = 0 : i64, scratch_operands = 0 : i64, tpu.core_type = #tpu.core_type<tc>, window_params = [{transform_indices = @transform_0, window_bounds = array<i64: 1, 4, 8, 256>}, {pipeline_mode = #tpu.pipeline_mode<synchronous>, transform_indices = @transform_1, window_bounds = array<i64: 9, 8, 8>}, {transform_indices = @transform_2, window_bounds = array<i64: 1, 8, 128>}]} {
    %cst = arith.constant 0.000000e+00 : f32
    %0 = vector.broadcast %cst : f32 to vector<8x128xf32>
    %c0 = arith.constant 0 : index
    %c0_0 = arith.constant 0 : index
    %c0_1 = arith.constant 0 : index
    %c0_2 = arith.constant 0 : index
    %1 = vector.load %arg1[%c0, %c0_0, %c0_1, %c0_2] : memref<1x4x8x256xbf16, #tpu.memory_space<vmem>>, vector<1x1x8x128xbf16>
    %2 = vector.shape_cast %1 : vector<1x1x8x128xbf16> to vector<8x128xbf16>
    %c0_3 = arith.constant 0 : index
    %c0_4 = arith.constant 0 : index
    %c0_5 = arith.constant 0 : index
    %3 = vector.load %arg2[%c0_3, %c0_4, %c0_5] : memref<9x8x8xbf16, #tpu.memory_space<vmem>>, vector<1x8x8xbf16>
    %4 = vector.shape_cast %3 : vector<1x8x8xbf16> to vector<8x8xbf16>
    %cst_6 = arith.constant dense<0.000000e+00> : vector<8x128xf32>
    %5 = tpu.matmul %4, %2, %cst_6 {dimension_numbers = #tpu.dot_dimension_numbers<[1], [0], [0], [1], [0, 0, 1, 1], [], []>} : vector<8x8xbf16>, vector<8x128xbf16>, vector<8x128xf32> -> vector<8x128xf32>
    %6 = arith.addf %0, %5 : vector<8x128xf32>
    %c0_7 = arith.constant 0 : index
    %c1 = arith.constant 1 : index
    %c0_8 = arith.constant 0 : index
    %c0_9 = arith.constant 0 : index
    %7 = vector.load %arg1[%c0_7, %c1, %c0_8, %c0_9] : memref<1x4x8x256xbf16, #tpu.memory_space<vmem>>, vector<1x1x8x128xbf16>
    %8 = vector.shape_cast %7 : vector<1x1x8x128xbf16> to vector<8x128xbf16>
    %c1_10 = arith.constant 1 : index
    %c0_11 = arith.constant 0 : index
    %c0_12 = arith.constant 0 : index
    %9 = vector.load %arg2[%c1_10, %c0_11, %c0_12] : memref<9x8x8xbf16, #tpu.memory_space<vmem>>, vector<1x8x8xbf16>
    %10 = vector.shape_cast %9 : vector<1x8x8xbf16> to vector<8x8xbf16>
    %cst_13 = arith.constant dense<0.000000e+00> : vector<8x128xf32>
    %11 = tpu.matmul %10, %8, %cst_13 {dimension_numbers = #tpu.dot_dimension_numbers<[1], [0], [0], [1], [0, 0, 1, 1], [], []>} : vector<8x8xbf16>, vector<8x128xbf16>, vector<8x128xf32> -> vector<8x128xf32>
    %12 = arith.addf %6, %11 : vector<8x128xf32>
    %c0_14 = arith.constant 0 : index
    %c0_15 = arith.constant 0 : index
    %c0_16 = arith.constant 0 : index
    %c1_17 = arith.constant 1 : index
    %13 = vector.load %arg1[%c0_14, %c0_15, %c0_16, %c1_17] : memref<1x4x8x256xbf16, #tpu.memory_space<vmem>>, vector<1x1x8x128xbf16>
    %14 = vector.shape_cast %13 : vector<1x1x8x128xbf16> to vector<8x128xbf16>
    %c2 = arith.constant 2 : index
    %c0_18 = arith.constant 0 : index
    %c0_19 = arith.constant 0 : index
    %15 = vector.load %arg2[%c2, %c0_18, %c0_19] : memref<9x8x8xbf16, #tpu.memory_space<vmem>>, vector<1x8x8xbf16>
    %16 = vector.shape_cast %15 : vector<1x8x8xbf16> to vector<8x8xbf16>
    %cst_20 = arith.constant dense<0.000000e+00> : vector<8x128xf32>
    %17 = tpu.matmul %16, %14, %cst_20 {dimension_numbers = #tpu.dot_dimension_numbers<[1], [0], [0], [1], [0, 0, 1, 1], [], []>} : vector<8x8xbf16>, vector<8x128xbf16>, vector<8x128xf32> -> vector<8x128xf32>
    %18 = arith.addf %12, %17 : vector<8x128xf32>
    %c0_21 = arith.constant 0 : index
    %c2_22 = arith.constant 2 : index
    %c0_23 = arith.constant 0 : index
    %c0_24 = arith.constant 0 : index
    %19 = vector.load %arg1[%c0_21, %c2_22, %c0_23, %c0_24] : memref<1x4x8x256xbf16, #tpu.memory_space<vmem>>, vector<1x1x8x128xbf16>
    %20 = vector.shape_cast %19 : vector<1x1x8x128xbf16> to vector<8x128xbf16>
    %c3 = arith.constant 3 : index
    %c0_25 = arith.constant 0 : index
    %c0_26 = arith.constant 0 : index
    %21 = vector.load %arg2[%c3, %c0_25, %c0_26] : memref<9x8x8xbf16, #tpu.memory_space<vmem>>, vector<1x8x8xbf16>
    %22 = vector.shape_cast %21 : vector<1x8x8xbf16> to vector<8x8xbf16>
    %cst_27 = arith.constant dense<0.000000e+00> : vector<8x128xf32>
    %23 = tpu.matmul %22, %20, %cst_27 {dimension_numbers = #tpu.dot_dimension_numbers<[1], [0], [0], [1], [0, 0, 1, 1], [], []>} : vector<8x8xbf16>, vector<8x128xbf16>, vector<8x128xf32> -> vector<8x128xf32>
    %24 = arith.addf %18, %23 : vector<8x128xf32>
    %c0_28 = arith.constant 0 : index
    %c3_29 = arith.constant 3 : index
    %c0_30 = arith.constant 0 : index
    %c0_31 = arith.constant 0 : index
    %25 = vector.load %arg1[%c0_28, %c3_29, %c0_30, %c0_31] : memref<1x4x8x256xbf16, #tpu.memory_space<vmem>>, vector<1x1x8x128xbf16>
    %26 = vector.shape_cast %25 : vector<1x1x8x128xbf16> to vector<8x128xbf16>
    %c4 = arith.constant 4 : index
    %c0_32 = arith.constant 0 : index
    %c0_33 = arith.constant 0 : index
    %27 = vector.load %arg2[%c4, %c0_32, %c0_33] : memref<9x8x8xbf16, #tpu.memory_space<vmem>>, vector<1x8x8xbf16>
    %28 = vector.shape_cast %27 : vector<1x8x8xbf16> to vector<8x8xbf16>
    %cst_34 = arith.constant dense<0.000000e+00> : vector<8x128xf32>
    %29 = tpu.matmul %28, %26, %cst_34 {dimension_numbers = #tpu.dot_dimension_numbers<[1], [0], [0], [1], [0, 0, 1, 1], [], []>} : vector<8x8xbf16>, vector<8x128xbf16>, vector<8x128xf32> -> vector<8x128xf32>
    %30 = arith.addf %24, %29 : vector<8x128xf32>
    %c0_35 = arith.constant 0 : index
    %c2_36 = arith.constant 2 : index
    %c0_37 = arith.constant 0 : index
    %c1_38 = arith.constant 1 : index
    %31 = vector.load %arg1[%c0_35, %c2_36, %c0_37, %c1_38] : memref<1x4x8x256xbf16, #tpu.memory_space<vmem>>, vector<1x1x8x128xbf16>
    %32 = vector.shape_cast %31 : vector<1x1x8x128xbf16> to vector<8x128xbf16>
    %c5 = arith.constant 5 : index
    %c0_39 = arith.constant 0 : index
    %c0_40 = arith.constant 0 : index
    %33 = vector.load %arg2[%c5, %c0_39, %c0_40] : memref<9x8x8xbf16, #tpu.memory_space<vmem>>, vector<1x8x8xbf16>
    %34 = vector.shape_cast %33 : vector<1x8x8xbf16> to vector<8x8xbf16>
    %cst_41 = arith.constant dense<0.000000e+00> : vector<8x128xf32>
    %35 = tpu.matmul %34, %32, %cst_41 {dimension_numbers = #tpu.dot_dimension_numbers<[1], [0], [0], [1], [0, 0, 1, 1], [], []>} : vector<8x8xbf16>, vector<8x128xbf16>, vector<8x128xf32> -> vector<8x128xf32>
    %36 = arith.addf %30, %35 : vector<8x128xf32>
    %c0_42 = arith.constant 0 : index
    %c0_43 = arith.constant 0 : index
    %c0_44 = arith.constant 0 : index
    %c9 = arith.constant 9 : index
    %37 = vector.load %arg1[%c0_42, %c0_43, %c0_44, %c9] : memref<1x4x8x256xbf16, #tpu.memory_space<vmem>>, vector<1x1x8x128xbf16>
    %38 = vector.shape_cast %37 : vector<1x1x8x128xbf16> to vector<8x128xbf16>
    %c6 = arith.constant 6 : index
    %c0_45 = arith.constant 0 : index
    %c0_46 = arith.constant 0 : index
    %39 = vector.load %arg2[%c6, %c0_45, %c0_46] : memref<9x8x8xbf16, #tpu.memory_space<vmem>>, vector<1x8x8xbf16>
    %40 = vector.shape_cast %39 : vector<1x8x8xbf16> to vector<8x8xbf16>
    %cst_47 = arith.constant dense<0.000000e+00> : vector<8x128xf32>
    %41 = tpu.matmul %40, %38, %cst_47 {dimension_numbers = #tpu.dot_dimension_numbers<[1], [0], [0], [1], [0, 0, 1, 1], [], []>} : vector<8x8xbf16>, vector<8x128xbf16>, vector<8x128xf32> -> vector<8x128xf32>
    %42 = arith.addf %36, %41 : vector<8x128xf32>
    %c0_48 = arith.constant 0 : index
    %c1_49 = arith.constant 1 : index
    %c0_50 = arith.constant 0 : index
    %c9_51 = arith.constant 9 : index
    %43 = vector.load %arg1[%c0_48, %c1_49, %c0_50, %c9_51] : memref<1x4x8x256xbf16, #tpu.memory_space<vmem>>, vector<1x1x8x128xbf16>
    %44 = vector.shape_cast %43 : vector<1x1x8x128xbf16> to vector<8x128xbf16>
    %c7 = arith.constant 7 : index
    %c0_52 = arith.constant 0 : index
    %c0_53 = arith.constant 0 : index
    %45 = vector.load %arg2[%c7, %c0_52, %c0_53] : memref<9x8x8xbf16, #tpu.memory_space<vmem>>, vector<1x8x8xbf16>
    %46 = vector.shape_cast %45 : vector<1x8x8xbf16> to vector<8x8xbf16>
    %cst_54 = arith.constant dense<0.000000e+00> : vector<8x128xf32>
    %47 = tpu.matmul %46, %44, %cst_54 {dimension_numbers = #tpu.dot_dimension_numbers<[1], [0], [0], [1], [0, 0, 1, 1], [], []>} : vector<8x8xbf16>, vector<8x128xbf16>, vector<8x128xf32> -> vector<8x128xf32>
    %48 = arith.addf %42, %47 : vector<8x128xf32>
    %c0_55 = arith.constant 0 : index
    %c0_56 = arith.constant 0 : index
    %c0_57 = arith.constant 0 : index
    %c10 = arith.constant 10 : index
    %49 = vector.load %arg1[%c0_55, %c0_56, %c0_57, %c10] : memref<1x4x8x256xbf16, #tpu.memory_space<vmem>>, vector<1x1x8x128xbf16>
    %50 = vector.shape_cast %49 : vector<1x1x8x128xbf16> to vector<8x128xbf16>
    %c8 = arith.constant 8 : index
    %c0_58 = arith.constant 0 : index
    %c0_59 = arith.constant 0 : index
    %51 = vector.load %arg2[%c8, %c0_58, %c0_59] : memref<9x8x8xbf16, #tpu.memory_space<vmem>>, vector<1x8x8xbf16>
    %52 = vector.shape_cast %51 : vector<1x8x8xbf16> to vector<8x8xbf16>
    %cst_60 = arith.constant dense<0.000000e+00> : vector<8x128xf32>
    %53 = tpu.matmul %52, %50, %cst_60 {dimension_numbers = #tpu.dot_dimension_numbers<[1], [0], [0], [1], [0, 0, 1, 1], [], []>} : vector<8x8xbf16>, vector<8x128xbf16>, vector<8x128xf32> -> vector<8x128xf32>
    %54 = arith.addf %48, %53 : vector<8x128xf32>
    %55 = tpu.iota {dimensions = array<i32: 1>} : vector<1x128xi32>
    %c72_i32 = arith.constant 72 : i32
    %56 = vector.broadcast %c72_i32 : i32 to vector<1x128xi32>
    %57 = arith.cmpi slt, %55, %56 : vector<1x128xi32>
    %c9_i32 = arith.constant 9 : i32
    %c0_i32 = arith.constant 0 : i32
    %58 = arith.cmpi eq, %c9_i32, %c0_i32 : i32
    %c1_i32 = arith.constant 1 : i32
    %59 = arith.select %58, %c1_i32, %c9_i32 : i32
    %60 = vector.broadcast %59 : i32 to vector<1x128xi32>
    %61 = arith.remsi %55, %60 : vector<1x128xi32>
    %c0_i32_61 = arith.constant 0 : i32
    %62 = vector.broadcast %c0_i32_61 : i32 to vector<1x128xi32>
    %63 = arith.cmpi ne, %61, %62 : vector<1x128xi32>
    %c0_i32_62 = arith.constant 0 : i32
    %64 = vector.broadcast %c0_i32_62 : i32 to vector<1x128xi32>
    %65 = arith.cmpi slt, %61, %64 : vector<1x128xi32>
    %c0_i32_63 = arith.constant 0 : i32
    %66 = arith.cmpi slt, %59, %c0_i32_63 : i32
    %67 = vector.broadcast %66 : i1 to vector<1x128xi1>
    %68 = vector.broadcast %67 : vector<1x128xi1> to vector<1x128xi1>
    %69 = arith.xori %65, %68 : vector<1x128xi1>
    %70 = arith.andi %69, %63 : vector<1x128xi1>
    %71 = vector.broadcast %59 : i32 to vector<1x128xi32>
    %72 = arith.addi %61, %71 : vector<1x128xi32>
    %73 = arith.select %70, %72, %61 : vector<1x128xi1>, vector<1x128xi32>
    %c8_i32 = arith.constant 8 : i32
    %74 = vector.broadcast %c8_i32 : i32 to vector<1x128xi32>
    %75 = arith.cmpi slt, %73, %74 : vector<1x128xi32>
    %76 = arith.andi %57, %75 : vector<1x128xi1>
    %cst_64 = arith.constant 0.000000e+00 : f32
    %77 = vector.shape_cast %76 : vector<1x128xi1> to vector<1x128xi1>
    %78 = vector.broadcast %77 : vector<1x128xi1> to vector<8x128xi1>
    %79 = vector.broadcast %cst_64 : f32 to vector<8x128xf32>
    %80 = arith.select %78, %54, %79 : vector<8x128xi1>, vector<8x128xf32>
    %cst_65 = arith.constant dense<0.000000e+00> : vector<8xf32>
    %81 = vector.multi_reduction <add>, %80, %cst_65 [1] : vector<8x128xf32> to vector<8xf32>
    %82 = vector.shape_cast %81 : vector<8xf32> to vector<8x1xf32>
    %cst_66 = arith.constant 1.562500e-02 : f32
    %83 = vector.broadcast %cst_66 : f32 to vector<8x1xf32>
    %84 = arith.mulf %82, %83 : vector<8x1xf32>
    %85 = vector.broadcast %84 : vector<8x1xf32> to vector<8x128xf32>
    %86 = arith.subf %54, %85 : vector<8x128xf32>
    %cst_67 = arith.constant 0.000000e+00 : f32
    %87 = vector.shape_cast %76 : vector<1x128xi1> to vector<1x128xi1>
    %88 = vector.broadcast %87 : vector<1x128xi1> to vector<8x128xi1>
    %89 = vector.broadcast %cst_67 : f32 to vector<8x128xf32>
    %90 = arith.select %88, %86, %89 : vector<8x128xi1>, vector<8x128xf32>
    %91 = arith.mulf %90, %90 : vector<8x128xf32>
    %cst_68 = arith.constant dense<0.000000e+00> : vector<8xf32>
    %92 = vector.multi_reduction <add>, %91, %cst_68 [1] : vector<8x128xf32> to vector<8xf32>
    %93 = vector.shape_cast %92 : vector<8xf32> to vector<8x1xf32>
    %cst_69 = arith.constant 1.562500e-02 : f32
    %94 = vector.broadcast %cst_69 : f32 to vector<8x1xf32>
    %95 = arith.mulf %93, %94 : vector<8x1xf32>
    %cst_70 = arith.constant 9.99999974E-6 : f32
    %96 = vector.broadcast %cst_70 : f32 to vector<8x1xf32>
    %97 = arith.addf %95, %96 : vector<8x1xf32>
    %98 = math.rsqrt %97 : vector<8x1xf32>
    %99 = vector.broadcast %84 : vector<8x1xf32> to vector<8x128xf32>
    %100 = arith.subf %54, %99 : vector<8x128xf32>
    %101 = vector.broadcast %98 : vector<8x1xf32> to vector<8x128xf32>
    %102 = arith.mulf %100, %101 : vector<8x128xf32>
    %cst_71 = arith.constant 0.000000e+00 : f32
    %103 = vector.broadcast %cst_71 : f32 to vector<8x128xf32>
    %104 = arith.maximumf %102, %103 : vector<8x128xf32>
    %c0_72 = arith.constant 0 : index
    %c0_73 = arith.constant 0 : index
    %c0_74 = arith.constant 0 : index
    %105 = vector.load %arg3[%c0_72, %c0_73, %c0_74] : memref<1x8x128xf32, #tpu.memory_space<vmem>>, vector<1x8x128xf32>
    %106 = vector.shape_cast %105 : vector<1x8x128xf32> to vector<8x128xf32>
    %107 = vector.shape_cast %104 : vector<8x128xf32> to vector<1x8x128xf32>
    tpu.vector_store %arg3[%c0_72, %c0_73, %c0_74], %107 {strides = array<i32>} : memref<1x8x128xf32, #tpu.memory_space<vmem>>, vector<1x8x128xf32>,
    return
  }
  func.func @transform_0(%arg0: i32) -> (i32, i32, i32, i32) {
    %c0_i32 = arith.constant 0 : i32
    %c0_i32_0 = arith.constant 0 : i32
    %c0_i32_1 = arith.constant 0 : i32
    %c0_i32_2 = arith.constant 0 : i32
    return %arg0, %c0_i32, %c0_i32_0, %c0_i32_1 : i32, i32, i32, i32
  }
  func.func @transform_1(%arg0: i32) -> (i32, i32, i32) {
    %c0_i32 = arith.constant 0 : i32
    %c0_i32_0 = arith.constant 0 : i32
    %c0_i32_1 = arith.constant 0 : i32
    %c0_i32_2 = arith.constant 0 : i32
    return %c0_i32, %c0_i32_0, %c0_i32_1 : i32, i32, i32
  }
  func.func @transform_2(%arg0: i32) -> (i32, i32, i32) {
    %c0_i32 = arith.constant 0 : i32
    %c0_i32_0 = arith.constant 0 : i32
    %c0_i32_1 = arith.constant 0 : i32
    return %arg0, %c0_i32, %c0_i32_0 : i32, i32, i32
  }
}

</mosaic_0001>

<bundles_post_ra>
// kernel: tpu_custom_call.1
= control target key start
LH: loop header
LB: loop body
LE: loop exit
PB: predicated region body
PF: predicated region fallthrough
CT: control target
= control target key end

     0   :  { %7 = vsyncpa [#allocation3], 0  ;;  %s1214_s0 = inlined_call_operand.vmem [shape: bf16[2,4,8,256], index: 0, kind: input, shape index: {}]   ;;  %s1215_s1 = inlined_call_operand.vmem [shape: bf16[9,8,8], index: 1, kind: input, shape index: {}]   ;;  %s1216_s2 = inlined_call_operand.hbm [shape: f32[2,8,128], index: 2, kind: output, shape index: {}]  }
   0x1   :  { %9 = vsyncpa [#allocation3 + $0x1], 0  ;;  %s1027_s9 = smov 0   ;;  %s1029_s10 = smov 0  }
   0x2   :  { %s1031_s11 = smov 0   ;;  %s1033_s12 = smov 0  }
   0x3 LB: > { %s1048_s13 = sadd.s32 4294967295, %s1004_s12   ;;  %s747_s14 = sadd.s32 4294967294, %s1004_s12   ;;  %s1004_s12 = sphi %s1033_s12, %s1222_s12   ;;  %s1000_s11 = sphi %s1031_s11, %s1221_s11   ;;  %s996_s10 = sphi %s1029_s10, %s1220_s10   ;;  %s992_s9 = sphi %s1027_s9, %s1219_s9  }
   0x4   : > { %s1052_s15 = sadd.s32 1, %s1004_s12   ;;  %s69_s16 = sadd.s32 1, %s1000_s11 }
   0x5   : > { %s66_s17 = ssub.s32 %s1004_s12, %s1052_s15  ;;  %p79_p0 = scmp.ne.s32.totalorder %s1000_s11, %s996_s10 }
   0x6   : > { %p67_p1 = scmp.eq.s32.totalorder %s66_s17, 0  ;;  %p80_p2 = scmp.eq.s32.totalorder %s1048_s13, 1 }
   0x7   : > { %p85_p3 = scmp.ne.s32.totalorder %s996_s10, %s992_s9  ;;  %p86_p4 = scmp.eq.s32.totalorder %s747_s14, 1 }
   0x8   : > { %s1063_s18 = scalar_select %p67_p1, %s1000_s11, %s69_s16  }
   0x9   : > { %p1065_p5 = por %p80_p2, %p79_p0  ;;  %p1069_p6 = por %p86_p4, %p85_p3 }
   0xa   : > { %p750_p7 = scmp.ge.s32.totalorder %s1004_s12, 1  ;;  %p115_p8 = scmp.lt.s32.totalorder %s1004_s12, 3 }
   0xc   : > { %p116_p9 = pnand %p750_p7, %p115_p8 }
   0xd   : > { %p137_p10 = scmp.lt.s32.totalorder (!%p116_p9), %s1048_s13, 1  ;;  %v1006_v0 = vmov (!%p116_p9), 0.0   ;;  %vm1007_vm0 = vmmov (!%p116_p9), 0   ;;  %vm153_vm1 = vcmask (!%p116_p9), 1043456   ;;  %s1008_s26 = smov (!%p116_p9), 127   ;;  %vm149_vm2 = vcmask (!%p116_p9), 64512  }
   0xe   : > { %119 = sbr.rel (%p116_p9) target bundleno = 727 (0x2d7), region = 28  ;;  %805 = vmatprep.subr.bf16.mxu1 (!%p116_p9), %v1006_v0  ;;  %807 = vmatprep.mubr.msk.bf16.mxu1 (!%p116_p9), %vm1007_vm0, %v1006_v0  ;;  %s1009_s27 = smov (!%p116_p9), 119   ;;  %v755_v12 = vld [vmem:[%s1215_s1 + $0x4] sm:$0xf] (!%p116_p9)  ;;  %v766_v13 = vld [vmem:[%s1215_s1 + $0x10] sm:$0xf] (!%p116_p9)  ;;  %v636_v47 = vlaneseq (!%p116_p9) }
   0xf   : > { %829 = vmatprep.subr.bf16.mxu0 (!%p116_p9), %v1006_v0  ;;  %831 = vmatprep.mubr.msk.bf16.mxu0 (!%p116_p9), %vm1007_vm0, %v1006_v0  ;;  %v144_v18 = vld [vmem:[%s1215_s1] sm:$0xf] (!%p116_p9)  ;;  %s1010_s6 = smov (!%p116_p9), 118   ;;  %vm255_vm3 = vcmask (!%p116_p9), 1039360   ;;  %vm472_vm4 = vcmask (!%p116_p9), 973824   ;;  %vm587_vm5 = vcmask (!%p116_p9), 965632  }
  0x10   : > { %v769_v26 = vld [vmem:[%s1215_s1 + $0x14] sm:$0xf] (!%p116_p9)  ;;  %v758_v33 = vld [vmem:[%s1215_s1 + $0x8] sm:$0xf] (!%p116_p9)  ;;  %v773_v38 = vld [vmem:[%s1215_s1 + $0x18] sm:$0xf] (!%p116_p9) }
  0x11   : > { %v763_v40 = vld [vmem:[%s1215_s1 + $0xc] sm:$0xf] (!%p116_p9)  ;;  %v776_v44 = vld [vmem:[%s1215_s1 + $0x1c] sm:$0xf] (!%p116_p9)  ;;  %v780_v46 = vld [vmem:[%s1215_s1 + $0x20] sm:$0xf] (!%p116_p9) }
  0x12   : > { %v637_v48 = vand.u32 (!%p116_p9), 127, %v636_v47  ;;  %s134_s28 = sand.u32 (!%p116_p9), 1, %s996_s10   ;;  %s783_s30 = sshll.u32 (!%p116_p9), %s1048_s13, 7 }
  0x13   : > { %s751_s29 = sshll.u32 (!%p116_p9), %s134_s28, 3  ;;  %s1172_s7 = scalar_lea.hbm (!%p116_p9), %s1216_s2, %s783_s30 }
  0x14   : > { %v1163_v49 = vmul.u32.u64.low (!%p116_p9), 3817748708, %v637_v48  ;;  %v1164_v50 = vmul.u32.u64.high 3817748708, %v637_v48, %v1163_v49  ;;  %vm638_vm9 = vcmp.lt.s32.totalorder (!%p116_p9), %v637_v48, 72  ;;  %s136_s3 = scalar_lea.vmem (!%p116_p9), [#allocation2], %s751_s29  ;;  %s675_s8 = scalar_lea.sflag (!%p116_p9), [#allocation3], %s134_s28 }
  0x15   : > { %s138_s21 = scalar_select %p137_p10, %s1048_s13, 1 }
  0x16   : > { %v645_v51 = vshrl.u32 %v1164_v50, 3  ;;  %s688_s4 = sshll.u32 %s136_s3, 4  ;;  %s1011_s13 = smov [#allocation2]   ;;  %s1174_s4 = int_to_ptr.vmem [resolvable:$true] %s688_s4 }
  0x17   : > { %s786_s22 = sshll.u32 %s138_s21, 5  ;;  %s942_s14 = scalar_lea.vmem %s1174_s4, 128 }
  0x18   : > { %s1086_s25 = scalar_lea.vmem %s1214_s0, %s786_s22  ;;  %v646_v53 = vmul.u32 9, %v645_v51  ;;  %p943_p11 = scmp.ne.s32.totalorder %s1174_s4, %s942_s14 }
  0x19   : > { %v768_v1 = vld [vmem:[%s1086_s25 + $0x10] sm:$0xff]  ;;  %v243_v2 = vld [vmem:[%s1086_s25] sm:$0xff]  ;;  %v754_v5 = vld [vmem:[%s1086_s25 + $0x8] sm:$0xf]  ;;  %s946_s16 = sshll.u32 %s1011_s13, 4  ;;  %s947_s16 = int_to_ptr.vmem [resolvable:$false] %s946_s16 }
  0x1a   : > { %v770_v3 = vcombine.low %v768_v1, %v768_v1  ;;  %v759_v4 = vcombine.low %v243_v2, %v243_v2  ;;  %v765_v6 = vld [vmem:[%s1086_s25 + $0x18] sm:$0xf]  ;;  %v155_v7 = vsel %vm153_vm1, %v754_v5, 0  ;;  %v771_v9 = vcombine.high %v768_v1, %v768_v1  ;;  %v143_v11 = vld [vmem:[%s1086_s25] sm:$0xf]  ;;  %v775_v15 = vld [vmem:[%s1086_s25 + $0x8] sm:$0xff]  ;;  %p944_p12 = pnand %p943_p11, %p1065_p5  ;;  %p949_p0 = scmp.lt.s32.totalorder %s1174_s4, %s947_s16 }
  0x1b   : > { %v363_v8 = vsel %vm153_vm1, %v765_v6, 0  ;;  %v760_v10 = vcombine.high %v243_v2, %v243_v2  ;;  %806 = vmatpush3.bf16.msra.mxu1 %v155_v7  ;;  %v201_v14 = vsel %vm153_vm1, %v143_v11, 0  ;;  %v777_v16 = vcombine.low %v775_v15, %v775_v15  ;;  %v762_v31 = vld [vmem:[%s1086_s25 + $0x10] sm:$0xf]  ;;  %s948_s17 = scalar_lea.vmem %s947_s16, 256 }
  0x1c   : > { %414 = vrot.lane.b32.xlu0 %v770_v3, %s1008_s26  ;;  %468 = vrot.lane.b32.xlu1 %v759_v4, %s1009_s27  ;;  %v778_v17 = vcombine.high %v775_v15, %v775_v15  ;;  %v312_v34 = vsel %vm153_vm1, %v762_v31, 0  ;;  %v647_v57 = vsub.s32 %v637_v48, %v646_v53  ;;  %p945_p13 = pneg %p944_p12  ;;  %p950_p1 = scmp.lt.s32.totalorder %s948_s17, %s942_s14 }
  0x1d   : > { %830 = vmatpush3.bf16.msra.mxu0 %v363_v8  ;;  %811 = vmatprep.subr.bf16.mxu1 %v1006_v0 }
  0x1e   : > { %835 = vmatprep.subr.bf16.mxu0 %v1006_v0  ;;  %808 = vmatmul.mubr.msk.bf16.vlgmr.msra.gmra.mrb[0].mxu1 %vm149_vm2, %v755_v12  ;;  %vm650_vm6 = vcmp.ne.s32.totalorder %v647_v57, 0  ;;  %vm651_vm7 = vcmp.lt.s32.totalorder %v647_v57, 0  ;;  %v653_v58 = vadd.s32 9, %v647_v57  ;;  %p951_p2 = por %p950_p1, %p949_p0 }
  0x1f   : > { %812 = vmatpush3.bf16.msra.mxu1 %v201_v14  ;;  %813 = vmatprep.mubr.msk.bf16.mxu1 %vm1007_vm0, %v1006_v0  ;;  %vm652_vm8 = vmand %vm651_vm7, %vm650_vm6 }
  0x20   : > { %416 = vrot.lane.b32.xlu0 %v771_v9, %s1008_s26  ;;  %470 = vrot.lane.b32.xlu1 %v760_v10, %s1009_s27  ;;  %v654_v59 = vsel %vm652_vm8, %v653_v58, %v647_v57  ;;  %p952_p3 = pnand %p951_p2, %p945_p13 }
  0x21   : > { %832 = vmatmul.mubr.msk.bf16.vlgmr.msra.gmra.mrb[0].mxu0 %vm149_vm2, %v766_v13  ;;  %817 = vmatprep.subr.bf16.mxu1 %v1006_v0  ;;  %vm655_vm10 = vcmp.lt.s32.totalorder %v654_v59, 8 }
  0x22   : > { %837 = vmatprep.mubr.msk.bf16.mxu0 %vm1007_vm0, %v1006_v0  ;;  %vm656_vm11 = vmand %vm638_vm9, %vm655_vm10 }
  0x24   : > { %251 = vrot.lane.b32.xlu0 %v759_v4, %s1008_s26  ;;  %253 = vrot.lane.b32.xlu1 %v760_v10, %s1008_s26 }
  0x28   : > { %529 = vrot.lane.b32.xlu0 %v777_v16, %s1009_s27  ;;  %531 = vrot.lane.b32.xlu1 %v778_v17, %s1009_s27 }
  0x2a   : > { %814 = vmatmul.mubr.msk.bf16.vlgmr.msra.gmra.mrb[0].mxu1 %vm149_vm2, %v144_v18 }
  0x2b   : > { %819 = vmatprep.mubr.msk.bf16.mxu1 %vm1007_vm0, %v1006_v0 }
  0x2c   : > { %583 = vrot.lane.b32.xlu0 %v759_v4, %s1010_s6  ;;  %585 = vrot.lane.b32.xlu1 %v760_v10, %s1010_s6 }
  0x8e   : > { %v415_v19 = vpop.permute.xlu0 %414  ;;  %v469_v20 = vpop.permute.xlu1 %468 }
  0x92   : > { %v417_v21 = vpop.permute.xlu0 %416  ;;  %v471_v22 = vpop.permute.xlu1 %470 }
  0x93   : > { %v418_v23 = vsel %vm255_vm3, %v415_v19, %v417_v21  ;;  %v473_v24 = vsel %vm472_vm4, %v469_v20, %v471_v22 }
  0x94   : > { %v423_v25 = vsel %vm153_vm1, %v418_v23, 0  ;;  %v478_v27 = vsel %vm153_vm1, %v473_v24, 0 }
  0x95   : > { %836 = vmatpush3.bf16.msra.mxu0 %v423_v25 }
  0x96   : > { %v252_v28 = vpop.permute.xlu0 %251  ;;  %v254_v29 = vpop.permute.xlu1 %253  ;;  %841 = vmatprep.subr.bf16.mxu0 %v1006_v0 }
  0x97   : > { %v256_v30 = vsel %vm255_vm3, %v252_v28, %v254_v29 }
  0x98   : > { %v261_v32 = vsel %vm153_vm1, %v256_v30, 0  ;;  %838 = vmatmul.mubr.msk.bf16.vlgmr.msra.gmra.mrb[0].mxu0 %vm149_vm2, %v769_v26 }
  0x99   : > { %818 = vmatpush3.bf16.msra.mxu1 %v261_v32  ;;  %842 = vmatpush3.bf16.msra.mxu0 %v478_v27 }
  0x9a   : > { %843 = vmatprep.mubr.msk.bf16.mxu0 %vm1007_vm0, %v1006_v0  ;;  %823 = vmatprep.subr.bf16.mxu1 %v1006_v0  ;;  %v530_v35 = vpop.permute.xlu0 %529  ;;  %v532_v36 = vpop.permute.xlu1 %531 }
  0x9b   : > { %847 = vmatprep.subr.bf16.mxu0 %v1006_v0  ;;  %v533_v37 = vsel %vm472_vm4, %v530_v35, %v532_v36 }
  0x9c   : > { %820 = vmatmul.mubr.msk.bf16.vlgmr.msra.gmra.mrb[0].mxu1 %vm149_vm2, %v758_v33  ;;  %v538_v39 = vsel %vm153_vm1, %v533_v37, 0 }
  0x9d   : > { %824 = vmatpush3.bf16.msra.mxu1 %v312_v34  ;;  %825 = vmatprep.mubr.msk.bf16.mxu1 %vm1007_vm0, %v1006_v0 }
  0x9e   : > { %v584_v41 = vpop.permute.xlu0 %583  ;;  %v586_v42 = vpop.permute.xlu1 %585 }
  0x9f   : > { %v588_v43 = vsel %vm587_vm5, %v584_v41, %v586_v42 }
  0xa0   : > { %v593_v45 = vsel %vm153_vm1, %v588_v43, 0 }
  0xa4   : > { %844 = vmatmul.mubr.msk.bf16.vlgmr.msra.gmra.mrb[0].mxu0 %vm149_vm2, %v773_v38 }
  0xa5   : > { %848 = vmatpush3.bf16.msra.mxu0 %v538_v39  ;;  %849 = vmatprep.mubr.msk.bf16.mxu0 %vm1007_vm0, %v1006_v0 }
  0xa6   : > { %853 = vmatprep.subr.bf16.mxu0 %v1006_v0 }
  0xa8   : > { %826 = vmatmul.mubr.msk.bf16.vlgmr.msra.gmra.mrb[0].mxu1 %vm149_vm2, %v763_v40 }
  0xb0   : > { %850 = vmatmul.mubr.msk.bf16.vlgmr.msra.gmra.mrb[0].mxu0 %vm149_vm2, %v776_v44 }
  0xb1   : > { %854 = vmatpush3.bf16.msra.mxu0 %v593_v45  ;;  %855 = vmatprep.mubr.msk.bf16.mxu0 %vm1007_vm0, %v1006_v0 }
  0xbc   : > { %856 = vmatmul.mubr.msk.bf16.vlgmr.msra.gmra.mrb[0].mxu0 %vm149_vm2, %v780_v46 }
 0x17b   : > { %v348_v52 = vpop.f32.mrb[0].mxu1 }
 0x17c   : > { %v827_v54 = vpop.f32.mrb[1].mxu1 }
 0x17d   : > { %v351_v55 = vpop.f32.mrb[2].mxu1 }
 0x17e   : > { %v828_v56 = vpop.f32.mrb[3].mxu1 }
 0x18f   : > { %v629_v60 = vpop.f32.mrb[0].mxu0 }
 0x190   : > { %v859_v61 = vadd.f32 %v629_v60, %v348_v52  ;;  %v857_v62 = vpop.f32.mrb[1].mxu0 }
 0x191   : > { %v632_v63 = vpop.f32.mrb[2].mxu0 }
 0x192   : > { %v858_v0 = vpop.f32.mrb[3].mxu0  ;;  %v659_v1 = vsel %vm656_vm11, %v859_v61, 0.0 }
 0x193   : > { %660 = vadd.xlane.f32.xlu0 %v659_v1 }
 0x220   : > { %v661_v2 = vpop.xlane.xlu0 %660 }
 0x221   : > { %v662_v3 = vmul.f32 0.015625, %v661_v2 }
 0x223   : > { %v663_v4 = vsub.f32 %v859_v61, %v662_v3 }
 0x225   : > { %v664_v5 = vsel %vm656_vm11, %v663_v4, 0.0 }
 0x226   : > { %v665_v6 = vmul.f32 %v664_v5, %v664_v5 }
 0x228   : > { %666 = vadd.xlane.f32.xlu1 %v665_v6 }
 0x2b5   : > { %v667_v7 = vpop.xlane.xlu1 %666 }
 0x2b6   : > { %v668_v8 = vmul.f32 0.015625, %v667_v7 }
 0x2b8   : > { %v669_v9 = vadd.f32 1e-05, %v668_v8 }
 0x2ba   : > { %940 = vrsqrt.f32 %v669_v9 }
 0x2c4   : > { %v941_v10 = vpop.eup %940 }
 0x2c5   : > { %v671_v11 = vmul.f32 %v941_v10, %v663_v4 }
 0x2c7   : > { %v672_v12 = vmax.f32 %v671_v11, 0.0 }
 0x2c9   : > { %673 = vst [vmem:[%s136_s3] sm:$0xff] %v672_v12 }
 0x2ca   : > { %955 = shalt.err (!%p952_p3)
}
 0x2cb   : > { %s956_s21 = scalar_lea.hbm %s1172_s7, 128  ;;  %s960_s24 = scalar_lea.hbm %s1216_s2, 256 }
 0x2cc   : > { %p957_p4 = scmp.ne.s32.totalorder %s1172_s7, %s956_s21  ;;  %p961_p9 = scmp.lt.u32.totalorder %s1172_s7, %s1216_s2 }
 0x2cd   : > { %p962_p10 = scmp.lt.u32.totalorder %s960_s24, %s956_s21  ;;  %p964_p12 = scmp.lt.u32.totalorder %s956_s21, %s1172_s7 }
 0x2ce   : > { %p958_p7 = pnand %p957_p4, %p1065_p5 }
 0x2cf   : > { %p963_p11 = por %p962_p10, %p961_p9 }
 0x2d0   : > { %p959_p8 = pneg %p958_p7 }
 0x2d1   : > { %p965_p13 = por %p964_p12, %p963_p11 }
 0x2d3   : > { %p966_p0 = pnand %p965_p13, %p959_p8 }
 0x2d5   : > { %969 = shalt.err (!%p966_p0)
}
 0x2d6   : > { %890 = dma.vmem_to_hbm [thread:$0]  (%p1065_p5), %s1174_s4, 128, %s1172_s7, %s675_s8  }
 0x2d7 PF: > { %p896_p1 = scmp.ge.s32.totalorder %s1004_s12, 2  ;;  %s700_s27 = sand.u32 1, %s992_s9  }
 0x2d8   : > { %s701_s28 = scalar_lea.sflag [#allocation3], %s700_s27 }
 0x2d9   : > { %p893_p2 = pnand %p896_p1, %p1069_p6 }
 0x2db   : > { %987 = dma.done.wait (!%p893_p2), %s701_s28, 128  }
 0x2dc   : > { %989 = vsyncadd (!%p893_p2), %s701_s28, 4294967168  ;;  %p12_p3 = scmp.ge.s32.totalorder %s1052_s15, 4   ;;  %s1219_s9 = smov %s996_s10 }
 0x2dd   : > { %s1220_s10 = smov %s1000_s11  ;;  %s1221_s11 = smov %s1063_s18 }
 0x2de   : > { %s1222_s12 = smov %s1052_s15  ;;  %14 = sbr.rel (!%p12_p3) target bundleno = 3 (0x3), region = 74 }
 0x2e5   :  { %706 = vsyncpa [#allocation3], 1 }
 0x2e6   :  { %708 = vsyncpa [#allocation3 + $0x1], 1 }

</bundles_post_ra>
